<compile_context>
chip_gen: v5e
topology: v5e:2x2
jax: 0.10.0
libtpu: 0.0.40
codegen_flags: <defaults>
</compile_context>

<pallas_src>
import numpy as np
import jax
import jax.numpy as jnp
from jax.experimental import pallas as pl
from jax.experimental.pallas import tpu as pltpu


_N_OUT_ROWS = 32  # 24 corner rows + 3 center + 3 arrow + 1 mask + 1 pad


# --------------------------------------------------------------------------
# Pallas kernel (lane-dense: box index on the lane axis)
# --------------------------------------------------------------------------
def _late_fusion_kernel(params_ref, corners_ref, ry_ref, out_ref):
    x = corners_ref[0]            # (8, TILE_N) f32 — corner x for 128+ boxes
    y = corners_ref[1]            # (8, TILE_N)
    z = corners_ref[2]            # (8, TILE_N)
    ry = ry_ref[...]              # (1, TILE_N)

    # rigid transform + filter-rect scalars from one flat SMEM array:
    #   params = [R00..R22 (row-major), t0, t1, t2, xmin, ymin, xmax, ymax]
    r00 = params_ref[0]; r01 = params_ref[1]; r02 = params_ref[2]
    r10 = params_ref[3]; r11 = params_ref[4]; r12 = params_ref[5]
    r20 = params_ref[6]; r21 = params_ref[7]; r22 = params_ref[8]
    t0 = params_ref[9]; t1 = params_ref[10]; t2 = params_ref[11]
    xmin = params_ref[12]; ymin = params_ref[13]
    xmax = params_ref[14]; ymax = params_ref[15]

    # 1. trans(box): corners' = R @ p + t   (pure VPU, full 128-lane vregs)
    tx = r00 * x + r01 * y + r02 * z + t0          # (8, TILE_N)
    ty = r10 * x + r11 * y + r12 * z + t1
    tz = r20 * x + r21 * y + r22 * z + t2

    # 2. trans(box_center): affine transform commutes with the corner mean,
    #    so average the already-transformed corners (no second 3x3 transform).
    tcx = jnp.mean(tx, axis=0, keepdims=True)      # (1, TILE_N)
    tcy = jnp.mean(ty, axis=0, keepdims=True)
    tcz = jnp.mean(tz, axis=0, keepdims=True)

    # 3. trans(arrow_ends): arrow dir in the source frame is [cos ry, sin ry, 0]
    #    => transformed end = trans(center) + 2 * R[:, :2] @ [cos, sin].
    #    cos/sin stay on the compact (1, TILE_N) row (N transcendentals, not 8N).
    c = jnp.cos(ry)
    s = jnp.sin(ry)
    tax = tcx + 2.0 * (r00 * c + r01 * s)
    tay = tcy + 2.0 * (r10 * c + r11 * s)
    taz = tcz + 2.0 * (r20 * c + r21 * s)

    # 4. pred_filter: keep box if ANY transformed corner is inside the rect.
    inside = ((tx >= xmin) & (tx <= xmax) &
              (ty >= ymin) & (ty <= ymax)).astype(jnp.float32)   # (8, TILE_N)
    keep = jnp.max(inside, axis=0, keepdims=True)                # (1, TILE_N)

    # Single lane-dense output slab (unmasked, full-lane stores).
    out_ref[0:8, :] = tx
    out_ref[8:16, :] = ty
    out_ref[16:24, :] = tz
    out_ref[24:25, :] = tcx
    out_ref[25:26, :] = tcy
    out_ref[26:27, :] = tcz
    out_ref[27:28, :] = tax
    out_ref[28:29, :] = tay
    out_ref[29:30, :] = taz
    out_ref[30:31, :] = keep
    out_ref[31:32, :] = jnp.zeros_like(keep)


# --------------------------------------------------------------------------
# Wrappers
# --------------------------------------------------------------------------
def _pick_tile(n):
    tile = 128 if n <= 512 else 512
    n_pad = ((n + tile - 1) // tile) * tile
    return n_pad, tile


def late_fusion_veh_call(corners, ry, R, t, lims):
    """Launch the fused kernel. Returns (device slab (32, N_pad) f32, N)."""
    corners = jnp.asarray(corners, jnp.float32)
    n = corners.shape[0]
    ry = jnp.asarray(ry, jnp.float32).reshape(n)
    n_pad, tile = _pick_tile(n)

    # Lane-dense inputs: box index -> last (lane) axis, padded to a tile multiple.
    corners_ld = jnp.transpose(corners, (2, 1, 0))                 # (3, 8, N)
    corners_ld = jnp.pad(corners_ld, ((0, 0), (0, 0), (0, n_pad - n)))
    ry_ld = jnp.pad(ry.reshape(1, n), ((0, 0), (0, n_pad - n)))    # (1, N_pad)

    params = jnp.concatenate([
        jnp.asarray(R, jnp.float32).reshape(9),
        jnp.asarray(t, jnp.float32).reshape(3),
        jnp.asarray(lims, jnp.float32).reshape(4),
    ])                                                             # (16,) SMEM

    out = pl.pallas_call(
        _late_fusion_kernel,
        out_shape=jax.ShapeDtypeStruct((_N_OUT_ROWS, n_pad), jnp.float32),
        grid=(n_pad // tile,),
        in_specs=[
            pl.BlockSpec(memory_space=pltpu.MemorySpace.SMEM),     # params (16,)
            pl.BlockSpec((3, 8, tile), lambda i: (0, 0, i)),       # corners
            pl.BlockSpec((1, tile), lambda i: (0, i)),             # ry
        ],
        out_specs=pl.BlockSpec((_N_OUT_ROWS, tile), lambda i: (0, i)),
        compiler_params=pltpu.CompilerParams(
            dimension_semantics=("parallel",)),
    )(params, corners_ld, ry_ld)
    return out, n


def _unpack_slab(out_np, n):
    """Host-side unpack of the (32, N_pad) slab (padded lanes sliced off)."""
    box_t = np.stack([out_np[0:8, :n], out_np[8:16, :n], out_np[16:24, :n]],
                     axis=-1).transpose(1, 0, 2)                   # (N, 8, 3)
    centers_t = out_np[24:27, :n].T                                 # (N, 3)
    arrows_t = out_np[27:30, :n].T                                  # (N, 3)
    keep = out_np[30, :n] > 0.5                                     # (N,) bool
    return box_t, centers_t, arrows_t, keep


def late_fusion_veh_kernel(corners, ry, R, t, lims):
    """Fused box processing. Single kernel launch, single host transfer."""
    out, n = late_fusion_veh_call(corners, ry, R, t, lims)
    return _unpack_slab(np.asarray(out), n)   # one device->host transfer


# --------------------------------------------------------------------------
# Host glue: mirrors gen_pred_dict / the `remain` compaction of LateFusionVeh
# --------------------------------------------------------------------------
def gen_pred_dict(frame_id, timestamp, box, arrow, points, score, label):
    if len(label) == 0:
        score = [-2333]
        label = [-1]
    return {'info': frame_id, 'timestamp': timestamp,
            'boxes_3d': box.tolist(), 'arrows': arrow.tolist(),
            'scores_3d': score, 'labels_3d': label, 'points': points.tolist()}


def late_fusion_veh_forward(frame_id, timestamp, corners, ry, scores, labels,
                            R, t, lims):
    # TODO(synk): the upstream detector inference (inference_detector /
    # inference_mono_3d_detector), the pickle cache and file I/O have no
    # Pallas equivalent; detector outputs (corners, ry, scores, labels) are
    # taken as kernel inputs here.
    # TODO(synk): multiple frames could be batched along the lane-dense N
    # axis (per-frame R/t/lims rows in SMEM) to amortize the launch overhead;
    # that requires restructuring the host frame pipeline, so it is left out.
    box_t, center_t, arrow_t, keep = late_fusion_veh_kernel(corners, ry, R, t, lims)

    # data-dependent compaction (`box[remain]`) must stay on the host
    remain = np.nonzero(keep)[0]
    if remain.size >= 1:
        box = box_t[remain]
        box_center = center_t[remain][:, np.newaxis, :]
        arrow_ends = arrow_t[remain][:, np.newaxis, :]
        scores_out = np.asarray(scores)[remain]
        labels_out = np.asarray(labels)[remain]
    else:
        box = np.zeros((1, 8, 3))
        box_center = np.zeros((1, 1, 3))
        arrow_ends = np.zeros((1, 1, 3))
        scores_out = np.zeros(1)
        labels_out = np.zeros(1)

    save_data = np.array([])  # save_point_cloud / save_image disabled
    pred_dict = gen_pred_dict(frame_id, timestamp, box,
                              np.concatenate([box_center, arrow_ends], axis=1),
                              save_data, scores_out.tolist(), labels_out.tolist())
    return pred_dict, frame_id


# --------------------------------------------------------------------------
# Pure-numpy reference of the kernel math (correctness check)
# --------------------------------------------------------------------------
def _reference(corners, ry, R, t, lims):
    centers = corners.mean(axis=1)
    dirs = np.stack([np.cos(ry), np.sin(ry), np.zeros_like(ry)], axis=-1)
    arrows = centers + 2.0 * dirs
    tc = corners @ R.T + t
    tcen = centers @ R.T + t
    tarr = arrows @ R.T + t
    inside = ((tc[..., 0] >= lims[0]) & (tc[..., 0] <= lims[2]) &
              (tc[..., 1] >= lims[1]) & (tc[..., 1] <= lims[3]))
    keep = inside.any(axis=1)
    return tc, tcen, tarr, keep


if __name__ == "__main__":
    key = jax.random.PRNGKey(0)
    k1, k2, k3, k4 = jax.random.split(key, 4)

    N = 16  # number of detected boxes (small, synthetic)
    centers = jax.random.uniform(k1, (N, 1, 3), minval=-20.0, maxval=20.0)
    offsets = jax.random.uniform(k2, (N, 8, 3), minval=-2.0, maxval=2.0)
    corners = (centers + offsets).astype(jnp.float32)              # (N, 8, 3)
    ry = jax.random.uniform(k3, (N, 1), minval=-np.pi, maxval=np.pi).astype(jnp.float32)
    scores = jax.random.uniform(k4, (N,), minval=0.0, maxval=1.0)
    labels = jnp.full((N,), 2, dtype=jnp.int32)

    # deterministic rigid transform: rotation about z by 0.3 rad + translation
    theta = 0.3
    R = jnp.array([[np.cos(theta), -np.sin(theta), 0.0],
                   [np.sin(theta),  np.cos(theta), 0.0],
                   [0.0,            0.0,           1.0]], dtype=jnp.float32)
    t = jnp.array([1.5, -2.0, 0.5], dtype=jnp.float32)
    lims = jnp.array([-15.0, -15.0, 15.0, 15.0], dtype=jnp.float32)  # [xmin,ymin,xmax,ymax]

    # run the Pallas kernel once and block on the device result
    slab, n_boxes = late_fusion_veh_call(corners, ry, R, t, lims)
    jax.block_until_ready(slab)
    box_t, center_t, arrow_t, keep = _unpack_slab(np.asarray(slab), n_boxes)

    # correctness check vs numpy reference
    rc, rcen, rarr, rkeep = _reference(np.asarray(corners), np.asarray(ry)[:, 0],
                                       np.asarray(R), np.asarray(t), np.asarray(lims))
    np.testing.assert_allclose(box_t, rc, rtol=1e-5, atol=1e-4)
    np.testing.assert_allclose(center_t, rcen, rtol=1e-5, atol=1e-4)
    np.testing.assert_allclose(arrow_t, rarr, rtol=1e-5, atol=1e-4)
    np.testing.assert_array_equal(keep, rkeep)

    # full forward-path glue (pred_dict assembly)
    pred_dict, frame_id = late_fusion_veh_forward(
        "000123", 1.6e9, corners, ry, scores, labels, R, t, lims)
    assert pred_dict['info'] == frame_id
    assert len(pred_dict['boxes_3d']) == len(pred_dict['scores_3d'])

    print("KERNEL_OK")
</pallas_src>

<mosaic_0001>
module attributes {stable_mosaic.version = 11 : i64} {
  func.func @_late_fusion_kernel(%arg0: i32, %arg1: memref<16xf32, #tpu.memory_space<smem>>, %arg2: memref<3x8x128xf32, #tpu.memory_space<vmem>>, %arg3: memref<1x128xf32, #tpu.memory_space<vmem>>, %arg4: memref<32x128xf32, #tpu.memory_space<vmem>>) attributes {dimension_semantics = [#tpu.dimension_semantics<parallel>], iteration_bounds = array<i64: 1>, scalar_prefetch = 0 : i64, scratch_operands = 0 : i64, tpu.core_type = #tpu.core_type<tc>, window_params = [{transform_indices = @transform_0, window_bounds = array<i64: 16>}, {transform_indices = @transform_1, window_bounds = array<i64: 3, 8, 128>}, {transform_indices = @transform_2, window_bounds = array<i64: 1, 128>}, {transform_indices = @transform_3, window_bounds = array<i64: 32, 128>}]} {
    %c0 = arith.constant 0 : index
    %c0_0 = arith.constant 0 : index
    %c0_1 = arith.constant 0 : index
    %0 = vector.load %arg2[%c0, %c0_0, %c0_1] : memref<3x8x128xf32, #tpu.memory_space<vmem>>, vector<1x8x128xf32>
    %1 = vector.shape_cast %0 : vector<1x8x128xf32> to vector<8x128xf32>
    %c1 = arith.constant 1 : index
    %c0_2 = arith.constant 0 : index
    %c0_3 = arith.constant 0 : index
    %2 = vector.load %arg2[%c1, %c0_2, %c0_3] : memref<3x8x128xf32, #tpu.memory_space<vmem>>, vector<1x8x128xf32>
    %3 = vector.shape_cast %2 : vector<1x8x128xf32> to vector<8x128xf32>
    %c2 = arith.constant 2 : index
    %c0_4 = arith.constant 0 : index
    %c0_5 = arith.constant 0 : index
    %4 = vector.load %arg2[%c2, %c0_4, %c0_5] : memref<3x8x128xf32, #tpu.memory_space<vmem>>, vector<1x8x128xf32>
    %5 = vector.shape_cast %4 : vector<1x8x128xf32> to vector<8x128xf32>
    %c0_6 = arith.constant 0 : index
    %c0_7 = arith.constant 0 : index
    %6 = vector.load %arg3[%c0_6, %c0_7] : memref<1x128xf32, #tpu.memory_space<vmem>>, vector<1x128xf32>
    %c0_8 = arith.constant 0 : index
    %7 = memref.load %arg1[%c0_8] : memref<16xf32, #tpu.memory_space<smem>>
    %c1_9 = arith.constant 1 : index
    %8 = memref.load %arg1[%c1_9] : memref<16xf32, #tpu.memory_space<smem>>
    %c2_10 = arith.constant 2 : index
    %9 = memref.load %arg1[%c2_10] : memref<16xf32, #tpu.memory_space<smem>>
    %c3 = arith.constant 3 : index
    %10 = memref.load %arg1[%c3] : memref<16xf32, #tpu.memory_space<smem>>
    %c4 = arith.constant 4 : index
    %11 = memref.load %arg1[%c4] : memref<16xf32, #tpu.memory_space<smem>>
    %c5 = arith.constant 5 : index
    %12 = memref.load %arg1[%c5] : memref<16xf32, #tpu.memory_space<smem>>
    %c6 = arith.constant 6 : index
    %13 = memref.load %arg1[%c6] : memref<16xf32, #tpu.memory_space<smem>>
    %c7 = arith.constant 7 : index
    %14 = memref.load %arg1[%c7] : memref<16xf32, #tpu.memory_space<smem>>
    %c8 = arith.constant 8 : index
    %15 = memref.load %arg1[%c8] : memref<16xf32, #tpu.memory_space<smem>>
    %c9 = arith.constant 9 : index
    %16 = memref.load %arg1[%c9] : memref<16xf32, #tpu.memory_space<smem>>
    %c10 = arith.constant 10 : index
    %17 = memref.load %arg1[%c10] : memref<16xf32, #tpu.memory_space<smem>>
    %c11 = arith.constant 11 : index
    %18 = memref.load %arg1[%c11] : memref<16xf32, #tpu.memory_space<smem>>
    %c12 = arith.constant 12 : index
    %19 = memref.load %arg1[%c12] : memref<16xf32, #tpu.memory_space<smem>>
    %c13 = arith.constant 13 : index
    %20 = memref.load %arg1[%c13] : memref<16xf32, #tpu.memory_space<smem>>
    %c14 = arith.constant 14 : index
    %21 = memref.load %arg1[%c14] : memref<16xf32, #tpu.memory_space<smem>>
    %c15 = arith.constant 15 : index
    %22 = memref.load %arg1[%c15] : memref<16xf32, #tpu.memory_space<smem>>
    %23 = vector.broadcast %7 : f32 to vector<8x128xf32>
    %24 = arith.mulf %23, %1 : vector<8x128xf32>
    %25 = vector.broadcast %8 : f32 to vector<8x128xf32>
    %26 = arith.mulf %25, %3 : vector<8x128xf32>
    %27 = arith.addf %24, %26 : vector<8x128xf32>
    %28 = vector.broadcast %9 : f32 to vector<8x128xf32>
    %29 = arith.mulf %28, %5 : vector<8x128xf32>
    %30 = arith.addf %27, %29 : vector<8x128xf32>
    %31 = vector.broadcast %16 : f32 to vector<8x128xf32>
    %32 = arith.addf %30, %31 : vector<8x128xf32>
    %33 = vector.broadcast %10 : f32 to vector<8x128xf32>
    %34 = arith.mulf %33, %1 : vector<8x128xf32>
    %35 = vector.broadcast %11 : f32 to vector<8x128xf32>
    %36 = arith.mulf %35, %3 : vector<8x128xf32>
    %37 = arith.addf %34, %36 : vector<8x128xf32>
    %38 = vector.broadcast %12 : f32 to vector<8x128xf32>
    %39 = arith.mulf %38, %5 : vector<8x128xf32>
    %40 = arith.addf %37, %39 : vector<8x128xf32>
    %41 = vector.broadcast %17 : f32 to vector<8x128xf32>
    %42 = arith.addf %40, %41 : vector<8x128xf32>
    %43 = vector.broadcast %13 : f32 to vector<8x128xf32>
    %44 = arith.mulf %43, %1 : vector<8x128xf32>
    %45 = vector.broadcast %14 : f32 to vector<8x128xf32>
    %46 = arith.mulf %45, %3 : vector<8x128xf32>
    %47 = arith.addf %44, %46 : vector<8x128xf32>
    %48 = vector.broadcast %15 : f32 to vector<8x128xf32>
    %49 = arith.mulf %48, %5 : vector<8x128xf32>
    %50 = arith.addf %47, %49 : vector<8x128xf32>
    %51 = vector.broadcast %18 : f32 to vector<8x128xf32>
    %52 = arith.addf %50, %51 : vector<8x128xf32>
    %cst = arith.constant dense<0.000000e+00> : vector<128xf32>
    %53 = vector.multi_reduction <add>, %32, %cst [0] : vector<8x128xf32> to vector<128xf32>
    %54 = vector.shape_cast %53 : vector<128xf32> to vector<1x128xf32>
    %cst_11 = arith.constant 8.000000e+00 : f32
    %55 = vector.broadcast %cst_11 : f32 to vector<1x128xf32>
    %56 = arith.divf %54, %55 : vector<1x128xf32>
    %cst_12 = arith.constant dense<0.000000e+00> : vector<128xf32>
    %57 = vector.multi_reduction <add>, %42, %cst_12 [0] : vector<8x128xf32> to vector<128xf32>
    %58 = vector.shape_cast %57 : vector<128xf32> to vector<1x128xf32>
    %cst_13 = arith.constant 8.000000e+00 : f32
    %59 = vector.broadcast %cst_13 : f32 to vector<1x128xf32>
    %60 = arith.divf %58, %59 : vector<1x128xf32>
    %cst_14 = arith.constant dense<0.000000e+00> : vector<128xf32>
    %61 = vector.multi_reduction <add>, %52, %cst_14 [0] : vector<8x128xf32> to vector<128xf32>
    %62 = vector.shape_cast %61 : vector<128xf32> to vector<1x128xf32>
    %cst_15 = arith.constant 8.000000e+00 : f32
    %63 = vector.broadcast %cst_15 : f32 to vector<1x128xf32>
    %64 = arith.divf %62, %63 : vector<1x128xf32>
    %65 = math.cos %6 : vector<1x128xf32>
    %66 = math.sin %6 : vector<1x128xf32>
    %67 = vector.broadcast %7 : f32 to vector<1x128xf32>
    %68 = arith.mulf %67, %65 : vector<1x128xf32>
    %69 = vector.broadcast %8 : f32 to vector<1x128xf32>
    %70 = arith.mulf %69, %66 : vector<1x128xf32>
    %71 = arith.addf %68, %70 : vector<1x128xf32>
    %cst_16 = arith.constant 2.000000e+00 : f32
    %72 = vector.broadcast %cst_16 : f32 to vector<1x128xf32>
    %73 = arith.mulf %72, %71 : vector<1x128xf32>
    %74 = arith.addf %56, %73 : vector<1x128xf32>
    %75 = vector.broadcast %10 : f32 to vector<1x128xf32>
    %76 = arith.mulf %75, %65 : vector<1x128xf32>
    %77 = vector.broadcast %11 : f32 to vector<1x128xf32>
    %78 = arith.mulf %77, %66 : vector<1x128xf32>
    %79 = arith.addf %76, %78 : vector<1x128xf32>
    %cst_17 = arith.constant 2.000000e+00 : f32
    %80 = vector.broadcast %cst_17 : f32 to vector<1x128xf32>
    %81 = arith.mulf %80, %79 : vector<1x128xf32>
    %82 = arith.addf %60, %81 : vector<1x128xf32>
    %83 = vector.broadcast %13 : f32 to vector<1x128xf32>
    %84 = arith.mulf %83, %65 : vector<1x128xf32>
    %85 = vector.broadcast %14 : f32 to vector<1x128xf32>
    %86 = arith.mulf %85, %66 : vector<1x128xf32>
    %87 = arith.addf %84, %86 : vector<1x128xf32>
    %cst_18 = arith.constant 2.000000e+00 : f32
    %88 = vector.broadcast %cst_18 : f32 to vector<1x128xf32>
    %89 = arith.mulf %88, %87 : vector<1x128xf32>
    %90 = arith.addf %64, %89 : vector<1x128xf32>
    %91 = vector.broadcast %19 : f32 to vector<8x128xf32>
    %92 = arith.cmpf oge, %32, %91 : vector<8x128xf32>
    %93 = vector.broadcast %21 : f32 to vector<8x128xf32>
    %94 = arith.cmpf ole, %32, %93 : vector<8x128xf32>
    %95 = arith.andi %92, %94 : vector<8x128xi1>
    %96 = vector.broadcast %20 : f32 to vector<8x128xf32>
    %97 = arith.cmpf oge, %42, %96 : vector<8x128xf32>
    %98 = arith.andi %95, %97 : vector<8x128xi1>
    %99 = vector.broadcast %22 : f32 to vector<8x128xf32>
    %100 = arith.cmpf ole, %42, %99 : vector<8x128xf32>
    %101 = arith.andi %98, %100 : vector<8x128xi1>
    %102 = arith.extui %101 : vector<8x128xi1> to vector<8x128xi32>
    %103 = arith.sitofp %102 : vector<8x128xi32> to vector<8x128xf32>
    %cst_19 = arith.constant dense<0xFF800000> : vector<128xf32>
    %104 = vector.multi_reduction <maximumf>, %103, %cst_19 [0] : vector<8x128xf32> to vector<128xf32>
    %105 = vector.shape_cast %104 : vector<128xf32> to vector<1x128xf32>
    %c0_20 = arith.constant 0 : index
    %c0_21 = arith.constant 0 : index
    %106 = vector.load %arg4[%c0_20, %c0_21] : memref<32x128xf32, #tpu.memory_space<vmem>>, vector<8x128xf32>
    tpu.vector_store %arg4[%c0_20, %c0_21], %32 {strides = array<i32>} : memref<32x128xf32, #tpu.memory_space<vmem>>, vector<8x128xf32>,
    %c8_22 = arith.constant 8 : index
    %c0_23 = arith.constant 0 : index
    %107 = vector.load %arg4[%c8_22, %c0_23] : memref<32x128xf32, #tpu.memory_space<vmem>>, vector<8x128xf32>
    tpu.vector_store %arg4[%c8_22, %c0_23], %42 {strides = array<i32>} : memref<32x128xf32, #tpu.memory_space<vmem>>, vector<8x128xf32>,
    %c16 = arith.constant 16 : index
    %c0_24 = arith.constant 0 : index
    %108 = vector.load %arg4[%c16, %c0_24] : memref<32x128xf32, #tpu.memory_space<vmem>>, vector<8x128xf32>
    tpu.vector_store %arg4[%c16, %c0_24], %52 {strides = array<i32>} : memref<32x128xf32, #tpu.memory_space<vmem>>, vector<8x128xf32>,
    %c24 = arith.constant 24 : index
    %c0_25 = arith.constant 0 : index
    %109 = vector.load %arg4[%c24, %c0_25] : memref<32x128xf32, #tpu.memory_space<vmem>>, vector<1x128xf32>
    tpu.vector_store %arg4[%c24, %c0_25], %56 {strides = array<i32>} : memref<32x128xf32, #tpu.memory_space<vmem>>, vector<1x128xf32>,
    %c25 = arith.constant 25 : index
    %c0_26 = arith.constant 0 : index
    %110 = vector.load %arg4[%c25, %c0_26] : memref<32x128xf32, #tpu.memory_space<vmem>>, vector<1x128xf32>
    tpu.vector_store %arg4[%c25, %c0_26], %60 {strides = array<i32>} : memref<32x128xf32, #tpu.memory_space<vmem>>, vector<1x128xf32>,
    %c26 = arith.constant 26 : index
    %c0_27 = arith.constant 0 : index
    %111 = vector.load %arg4[%c26, %c0_27] : memref<32x128xf32, #tpu.memory_space<vmem>>, vector<1x128xf32>
    tpu.vector_store %arg4[%c26, %c0_27], %64 {strides = array<i32>} : memref<32x128xf32, #tpu.memory_space<vmem>>, vector<1x128xf32>,
    %c27 = arith.constant 27 : index
    %c0_28 = arith.constant 0 : index
    %112 = vector.load %arg4[%c27, %c0_28] : memref<32x128xf32, #tpu.memory_space<vmem>>, vector<1x128xf32>
    tpu.vector_store %arg4[%c27, %c0_28], %74 {strides = array<i32>} : memref<32x128xf32, #tpu.memory_space<vmem>>, vector<1x128xf32>,
    %c28 = arith.constant 28 : index
    %c0_29 = arith.constant 0 : index
    %113 = vector.load %arg4[%c28, %c0_29] : memref<32x128xf32, #tpu.memory_space<vmem>>, vector<1x128xf32>
    tpu.vector_store %arg4[%c28, %c0_29], %82 {strides = array<i32>} : memref<32x128xf32, #tpu.memory_space<vmem>>, vector<1x128xf32>,
    %c29 = arith.constant 29 : index
    %c0_30 = arith.constant 0 : index
    %114 = vector.load %arg4[%c29, %c0_30] : memref<32x128xf32, #tpu.memory_space<vmem>>, vector<1x128xf32>
    tpu.vector_store %arg4[%c29, %c0_30], %90 {strides = array<i32>} : memref<32x128xf32, #tpu.memory_space<vmem>>, vector<1x128xf32>,
    %c30 = arith.constant 30 : index
    %c0_31 = arith.constant 0 : index
    %115 = vector.load %arg4[%c30, %c0_31] : memref<32x128xf32, #tpu.memory_space<vmem>>, vector<1x128xf32>
    tpu.vector_store %arg4[%c30, %c0_31], %105 {strides = array<i32>} : memref<32x128xf32, #tpu.memory_space<vmem>>, vector<1x128xf32>,
    %cst_32 = arith.constant 0.000000e+00 : f32
    %116 = vector.broadcast %cst_32 : f32 to vector<1x128xf32>
    %c31 = arith.constant 31 : index
    %c0_33 = arith.constant 0 : index
    %117 = vector.load %arg4[%c31, %c0_33] : memref<32x128xf32, #tpu.memory_space<vmem>>, vector<1x128xf32>
    tpu.vector_store %arg4[%c31, %c0_33], %116 {strides = array<i32>} : memref<32x128xf32, #tpu.memory_space<vmem>>, vector<1x128xf32>,
    return
  }
  func.func @transform_0(%arg0: i32) -> i32 {
    %c0_i32 = arith.constant 0 : i32
    %c0_i32_0 = arith.constant 0 : i32
    return %c0_i32 : i32
  }
  func.func @transform_1(%arg0: i32) -> (i32, i32, i32) {
    %c0_i32 = arith.constant 0 : i32
    %c0_i32_0 = arith.constant 0 : i32
    %c0_i32_1 = arith.constant 0 : i32
    return %c0_i32, %c0_i32_0, %arg0 : i32, i32, i32
  }
  func.func @transform_2(%arg0: i32) -> (i32, i32) {
    %c0_i32 = arith.constant 0 : i32
    %c0_i32_0 = arith.constant 0 : i32
    return %c0_i32, %arg0 : i32, i32
  }
  func.func @transform_3(%arg0: i32) -> (i32, i32) {
    %c0_i32 = arith.constant 0 : i32
    %c0_i32_0 = arith.constant 0 : i32
    return %c0_i32, %arg0 : i32, i32
  }
}

</mosaic_0001>

<bundles_post_ra>
// kernel: tpu_custom_call.1
= control target key start
LH: loop header
LB: loop body
LE: loop exit
PB: predicated region body
PF: predicated region fallthrough
CT: control target
= control target key end

     0   :  { %8 = vsyncpa [#allocation5], 0  ;;  %s808_s0 = inlined_call_operand.hbm [shape: f32[16], index: 0, kind: input, shape index: {}]   ;;  %s809_s1 = inlined_call_operand.hbm [shape: f32[3,8,128], index: 1, kind: input, shape index: {}]   ;;  %s810_s2 = inlined_call_operand.vmem [shape: f32[1,128], index: 2, kind: input, shape index: {}]   ;;  %s811_s3 = inlined_call_operand.hbm [shape: f32[32,128], index: 3, kind: output, shape index: {}]  }
   0x1   :  { %9 = vsyncpa [#allocation3], 0 }
   0x2   :  { %10 = vsyncpa [#allocation4], 0  ;;  %s16_s14 = sshll.u32 %s808_s0, 4  ;;  %s24_s17 = sshll.u32 %s809_s1, 4  ;;  %s17_s14 = int_to_ptr.hbm [resolvable:$true] %s16_s14  ;;  %s25_s17 = int_to_ptr.hbm [resolvable:$true] %s24_s17 }
   0x3   :  { %s602_s18 = smov [#allocation2]   ;;  %s603_s19 = smov [#allocation6]  }
   0x4   :  { %19 = dma.hbm_to_smem %s17_s14, 16, %s602_s18, [#allocation5]  }
   0x5   :  { %s26_s20 = sshll.u32 %s603_s19, 4  ;;  %s604_s21 = smov 128   ;;  %s27_s20 = int_to_ptr.vmem [resolvable:$true] %s26_s20 }
   0x6   :  { %s605_s22 = smov 8  }
   0x7   :  { %32 = dma.hbm_to_vmem [thread:$0]  %s25_s17, 384, %s27_s20, [#allocation3], %s604_s21, %s604_s21, %s605_s22  }
   0x8   :  { %596 = dma.done.wait [#allocation5], 16  }
   0x9   :  { %597 = vsyncadd [#allocation5], 4294967280 }
   0xa   :  { %598 = dma.done.wait [#allocation3], 384  }
   0xb   :  { %599 = vsyncadd [#allocation3], 4294966912 }
   0xc   :  { %43 = sfence }
   0xd   :  { %s645_s0 = sld [smem:[#allocation2]]  ;;  %v606_v0 = vmov 8.0   ;;  %v652_v1 = vld [vmem:[%s810_s2] sm:$0x1]  ;;  %v46_v6 = vld [vmem:[#allocation6 + $0x8] sm:$0xff]  ;;  %v48_v7 = vld [vmem:[#allocation6 + $0x10] sm:$0xff] }
   0xe   :  { %s647_s1 = sld [smem:[#allocation2 + $0x1]]  ;;  %534 = vrcp.f32 %v606_v0  ;;  %v127_v2 = vand.u32 2139095040, %v652_v1  ;;  %v44_v3 = vld [vmem:[#allocation6] sm:$0xff]  ;;  %v124_v4 = vand.u32 2147483647, %v652_v1  ;;  %s615_s11 = smov [#allocation7]  }
   0xf   :  { %s499_s25 = sld [smem:[#allocation2 + $0x2]]  ;;  %v607_v50 = vmov 683565275   ;;  %v608_v53 = vmov 2475754826   ;;  %s482_s12 = sshll.u32 %s615_s11, 4  ;;  %s483_s12 = int_to_ptr.vmem [resolvable:$true] %s482_s12 }
  0x10   :  { %s655_s26 = sld [smem:[#allocation2 + $0x9]]  ;;  %v128_v5 = vshrl.u32 %v127_v2, 23  ;;  %v677_v16 = vand.u32 8388607, %v124_v4  ;;  %v609_v56 = vmov 2131351028  }
  0x11   :  { %s657_s27 = sld [smem:[#allocation2 + $0x3]]  ;;  %v610_v0 = vmov 2102212464   ;;  %s484_s15 = sshll.u32 %s811_s3, 4  ;;  %s485_s15 = int_to_ptr.hbm [resolvable:$true] %s484_s15 }
  0x12   :  { %s660_s28 = sld [smem:[#allocation2 + $0x4]]  ;;  %v513_v9 = vadd.s32 4294967169, %v128_v5  ;;  %v132_v28 = vor.u32 8388608, %v677_v16 }
  0x13   :  { %v66_v8 = vstv %s645_s0  ;;  %s502_s2 = sld [smem:[#allocation2 + $0x5]] }
  0x14   :  { %v663_v10 = vpop.eup %534  ;;  %v67_v11 = vmul.f32 %v66_v8, %v44_v3  ;;  %v68_v12 = vstv %s647_s1  ;;  %s668_s29 = sld [smem:[#allocation2 + $0xa]]  ;;  %v134_v18 = vadd.s32 1, %v513_v9  ;;  %v611_v9 = vmov 920167782  }
  0x15   :  { %v69_v13 = vmul.f32 %v68_v12, %v46_v6  ;;  %v71_v14 = vstv %s499_s25  ;;  %s672_s30 = sld [smem:[#allocation2 + $0x6]]  ;;  %v103_v15 = vmul.f32 8.0, %v663_v10  ;;  %vm107_vm1 = vweird.f32 %v663_v10 }
  0x16   :  { %v72_v17 = vmul.f32 %v71_v14, %v48_v7  ;;  %s679_s4 = sld [smem:[#allocation2 + $0x7]]  ;;  %v74_v22 = vstv %s655_s26  ;;  %vm135_vm0 = vcmp.gt.s32.totalorder %v134_v18, 0 }
  0x17   :  { %v70_v19 = vadd.f32 %v69_v13, %v67_v11  ;;  %v76_v20 = vstv %s657_s27  ;;  %s505_s5 = sld [smem:[#allocation2 + $0x8]]  ;;  %v104_v21 = vsub.f32 1.0, %v103_v15  ;;  %v136_v31 = vsel %vm135_vm0, %v134_v18, 0 }
  0x18   :  { %v77_v23 = vmul.f32 %v76_v20, %v44_v3  ;;  %v78_v24 = vstv %s660_s28  ;;  %s686_s6 = sld [smem:[#allocation2 + $0xb]]  ;;  %v138_v38 = vand.u32 31, %v136_v31  ;;  %v705_v45 = vshrl.u32 %v136_v31, 5 }
  0x19   :  { %v73_v25 = vadd.f32 %v72_v17, %v70_v19  ;;  %v79_v26 = vmul.f32 %v78_v24, %v46_v6  ;;  %v81_v27 = vstv %s502_s2  ;;  %v105_v30 = vmul.f32 %v663_v10, %v104_v21  ;;  %s509_s7 = sld [smem:[#allocation2 + $0xc]] }
  0x1a   :  { %v82_v29 = vmul.f32 %v81_v27, %v48_v7  ;;  %v84_v35 = vstv %s668_s29  ;;  %v707_v46 = vsub.s32 32, %v138_v38  ;;  %v141_v51 = vshll.u32 %v607_v50, %v138_v38  ;;  %s511_s8 = sld [smem:[#allocation2 + $0xe]] }
  0x1b   :  { %v692_v32 = vadd.f32 %v74_v22, %v73_v25  ;;  %v80_v33 = vadd.f32 %v79_v26, %v77_v23  ;;  %v86_v34 = vstv %s672_s30  ;;  %v106_v44 = vadd.f32 %v663_v10, %v105_v30  ;;  %s510_s9 = sld [smem:[#allocation2 + $0xd]] }
  0x1c   :  { %v87_v36 = vmul.f32 %v86_v34, %v44_v3  ;;  %v88_v37 = vstv %s679_s4  ;;  %v142_v54 = vshrl.u32 %v608_v53, %v707_v46  ;;  %v144_v55 = vshll.u32 %v608_v53, %v138_v38  ;;  %s512_s10 = sld [smem:[#allocation2 + $0xf]] }
  0x1d   :  { %467 = vst [vmem:[#allocation7] sm:$0xff] %v692_v32  ;;  %v83_v39 = vadd.f32 %v82_v29, %v80_v33  ;;  %v89_v40 = vmul.f32 %v88_v37, %v46_v6  ;;  %v91_v41 = vstv %s505_s5  ;;  %v96_v42 = vrot.slane %v692_v32, 4 }
  0x1e   :  { %v92_v43 = vmul.f32 %v91_v41, %v48_v7  ;;  %v94_v52 = vstv %s686_s6  ;;  %v145_v57 = vshrl.u32 %v609_v56, %v707_v46  ;;  %v147_v61 = vshll.u32 %v609_v56, %v138_v38 }
  0x1f   :  { %v709_v47 = vadd.f32 %v84_v35, %v83_v39  ;;  %v90_v48 = vadd.f32 %v89_v40, %v87_v36  ;;  %v97_v49 = vadd.f32 %v96_v42, %v692_v32  ;;  %v718_v62 = vor.u32 %v142_v54, %v141_v51 }
  0x20   :  { %v720_v63 = vor.u32 %v145_v57, %v144_v55  ;;  %v148_v2 = vshrl.u32 %v610_v0, %v707_v46  ;;  %v150_v3 = vshll.u32 %v610_v0, %v138_v38  ;;  %v151_v11 = vshrl.u32 %v611_v9, %v707_v46 }
  0x21   :  { %468 = vst [vmem:[#allocation7 + $0x8] sm:$0xff] %v709_v47  ;;  %v93_v58 = vadd.f32 %v92_v43, %v90_v48  ;;  %v98_v59 = vrot.slane %v97_v49, 2  ;;  %v110_v60 = vrot.slane %v709_v47, 4  ;;  %v153_v14 = vshll.u32 %v611_v9, %v138_v38 }
  0x22   :  { %v149_v13 = vor.u32 %v148_v2, %v147_v61  ;;  %v612_v15 = vmov 1326507024   ;;  %vm156_vm2 = vcmp.lt.s32.totalorder %v705_v45, 1  ;;  %v152_v21 = vor.u32 %v151_v11, %v150_v3 }
  0x23   :  { %v95_v5 = vadd.f32 %v94_v52, %v93_v58  ;;  %v99_v6 = vadd.f32 %v98_v59, %v97_v49  ;;  %v111_v7 = vadd.f32 %v110_v60, %v709_v47  ;;  %v154_v16 = vshrl.u32 %v612_v15, %v707_v46 }
  0x24   :  { %v108_v22 = vsel %vm107_vm1, %v663_v10, %v106_v44  ;;  %vm159_vm3 = vcmp.lt.s32.totalorder %v705_v45, 4  ;;  %v731_v25 = vshll.u32 %v132_v28, 8  ;;  %vm158_vm4 = vcmp.lt.s32.totalorder %v705_v45, 3 }
  0x25   :  { %v117_v17 = vrot.slane %v95_v5, 4  ;;  %469 = vst [vmem:[#allocation7 + $0x10] sm:$0xff] %v95_v5  ;;  %v100_v18 = vrot.slane %v99_v6, 1  ;;  %v112_v19 = vrot.slane %v111_v7, 2  ;;  %v155_v23 = vor.u32 %v154_v16, %v153_v14 }
  0x26   :  { %vm157_vm5 = vcmp.lt.s32.totalorder %v705_v45, 2  ;;  %v164_v30 = vsel %vm156_vm2, %v718_v62, %v720_v63  ;;  %v165_v10 = vsel %vm159_vm3, %v152_v21, 920167782  ;;  %v168_v35 = vsel %vm156_vm2, %v720_v63, %v149_v13 }
  0x27   :  { %v101_v26 = vadd.f32 %v100_v18, %v99_v6  ;;  %v113_v27 = vadd.f32 %v112_v19, %v111_v7  ;;  %v118_v29 = vadd.f32 %v117_v17, %v95_v5  ;;  %v166_v36 = vsel %vm158_vm4, %v149_v13, %v165_v10 }
  0x28   :  { %v169_v38 = vsel %vm159_vm3, %v155_v23, 1326507024  ;;  %v173_v39 = vand.u32 65535, %v731_v25  ;;  %v174_v40 = vshrl.u32 %v731_v25, 16  ;;  %v167_v43 = vsel %vm157_vm5, %v164_v30, %v166_v36 }
  0x29   :  { %v741_v31 = vmul.f32 %v108_v22, %v101_v26  ;;  %v114_v33 = vrot.slane %v113_v27, 1  ;;  %v119_v28 = vrot.slane %v118_v29, 2  ;;  %v170_v44 = vsel %vm158_vm4, %v152_v21, %v169_v38 }
  0x2a   :  { %v171_v48 = vsel %vm157_vm5, %v168_v35, %v170_v44  ;;  %v197_v49 = vand.u32 65535, %v167_v43  ;;  %v198_v51 = vshrl.u32 %v167_v43, 16  ;;  %v140_v56 = vshrl.u32 %v607_v50, %v707_v46 }
  0x2b   :  { %470 = vst [vmem:[#allocation7 + $0x18] sm:$0x1] %v741_v31  ;;  %v115_v41 = vadd.f32 %v114_v33, %v113_v27  ;;  %v120_v42 = vadd.f32 %v119_v28, %v118_v29  ;;  %v175_v54 = vand.u32 65535, %v171_v48  ;;  %v176_v55 = vshrl.u32 %v171_v48, 16 }
  0x2c   :  { %v199_v57 = vmul.u32 %v197_v49, %v173_v39  ;;  %v200_v58 = vmul.u32 %v198_v51, %v173_v39  ;;  %v201_v59 = vmul.u32 %v197_v49, %v174_v40  ;;  %v161_v3 = vsel %vm159_vm3, %v149_v13, 2102212464 }
  0x2d   :  { %v759_v52 = vmul.f32 %v115_v41, %v108_v22  ;;  %v121_v53 = vrot.slane %v120_v42, 1  ;;  %v177_v61 = vmul.u32 %v175_v54, %v173_v39  ;;  %v178_v0 = vmul.u32 %v176_v55, %v173_v39 }
  0x2e   :  { %v179_v2 = vmul.u32 %v175_v54, %v174_v40  ;;  %v202_v5 = vmul.u32 %v198_v51, %v174_v40  ;;  %v203_v6 = vshll.u32 %v200_v58, 16  ;;  %v205_v7 = vshll.u32 %v201_v59, 16 }
  0x2f   :  { %471 = vst [vmem:[#allocation7 + $0x19] sm:$0x1] %v759_v52  ;;  %v122_v60 = vadd.f32 %v121_v53, %v120_v42  ;;  %v180_v11 = vmul.u32 %v176_v55, %v174_v40  ;;  %v181_v14 = vshll.u32 %v178_v0, 16  ;;  %v160_v50 = vsel %vm156_vm2, %v140_v56, %v718_v62 }
  0x30   :  { %v183_v46 = vshll.u32 %v179_v2, 16  ;;  %vm207_vm6 = vc.u32 %v199_v57, %v203_v6  ;;  %v209_v15 = vadd.s32 %v203_v6, %v199_v57  ;;  %v162_v13 = vsel %vm158_vm4, %v720_v63, %v161_v3 }
  0x31   :  { %v766_v9 = vmul.f32 %v122_v60, %v108_v22  ;;  %vm185_vm7 = vc.u32 %v177_v61, %v181_v14  ;;  %v187_v16 = vadd.s32 %v181_v14, %v177_v61  ;;  %v613_v17 = vmov 0  }
  0x32   :  { %v208_v18 = vsel %vm207_vm6, 1, %v613_v17  ;;  %v186_v19 = vsel %vm185_vm7, 1, %v613_v17  ;;  %v204_v21 = vshrl.u32 %v200_v58, 16  ;;  %vm211_vm8 = vc.u32 %v209_v15, %v205_v7 }
  0x33   :  { %472 = vst [vmem:[#allocation7 + $0x1a] sm:$0x1] %v766_v9  ;;  %v210_v22 = vadd.s32 %v208_v18, %v202_v5  ;;  %v182_v23 = vshrl.u32 %v178_v0, 16  ;;  %v188_v26 = vadd.s32 %v186_v19, %v180_v11  ;;  %vm189_vm9 = vc.u32 %v187_v16, %v183_v46 }
  0x34   :  { %v212_v62 = vsel %vm211_vm8, 1, %v613_v17  ;;  %v190_v27 = vsel %vm189_vm9, 1, %v613_v17  ;;  %v206_v29 = vshrl.u32 %v201_v59, 16  ;;  %v184_v10 = vshrl.u32 %v179_v2, 16 }
  0x35   :  { %v214_v30 = vadd.s32 %v212_v62, %v210_v22  ;;  %v192_v33 = vadd.s32 %v190_v27, %v188_v26  ;;  %v163_v63 = vsel %vm157_vm5, %v160_v50, %v162_v13  ;;  %v213_v36 = vadd.s32 %v209_v15, %v205_v7 }
  0x36   :  { %v217_v40 = vmul.u32 %v731_v25, %v163_v63  ;;  %v448_v56 = vstv %s509_s7  ;;  %v450_v57 = vstv %s511_s8  ;;  %v453_v59 = vstv %s510_s9 }
  0x37   :  { %v215_v28 = vadd.s32 %v214_v30, %v204_v21  ;;  %v193_v35 = vadd.s32 %v192_v33, %v182_v23  ;;  %vm449_vm13 = vcmp.ge.f32.partialorder %v692_v32, %v448_v56  ;;  %vm451_vm14 = vcmp.le.f32.partialorder %v692_v32, %v450_v57 }
  0x38   :  { %vm452_vm15 = vmand %vm449_vm13, %vm451_vm14  ;;  %vm454_vm0 = vcmp.ge.f32.partialorder %v709_v47, %v453_v59  ;;  %v456_v5 = vstv %s512_s10  ;;  %v614_v11 = vmov 0.0   ;;  %vm126_vm4 = vcmp.lt.s32.totalorder %v652_v1, 0 }
  0x39   :  { %v216_v38 = vadd.s32 %v215_v28, %v206_v29  ;;  %v194_v39 = vadd.s32 %v193_v35, %v184_v10  ;;  %vm455_vm1 = vmand %vm452_vm15, %vm454_vm0  ;;  %vm457_vm2 = vcmp.le.f32.partialorder %v709_v47, %v456_v5  ;;  %477 = vst [vmem:[#allocation7 + $0x1f] sm:$0x1] %v614_v11  ;;  %vm125_vm5 = vcmp.le.f32.partialorder %v124_v4, 0.7853982 }
  0x3a   :  { %vm458_vm3 = vmand %vm455_vm1, %vm457_vm2 }
  0x3b   :  { %v220_v41 = vadd.s32 1, %v216_v38  ;;  %vm219_vm10 = vc.u32 %v194_v39, %v213_v36  ;;  %v218_v25 = vadd.s32 %v213_v36, %v194_v39  ;;  %v519_v46 = vsel %vm458_vm3, 1.0, %v614_v11 }
  0x3c   :  { %v461_v50 = vrot.slane %v519_v46, 4 }
  0x3d   :  { %v221_v42 = vsel %vm219_vm10, %v220_v41, %v216_v38 }
  0x3e   :  { %v222_v43 = vadd.s32 %v221_v42, %v217_v40  ;;  %v462_v13 = vmax.f32 %v519_v46, %v461_v50 }
  0x40   :  { %v223_v44 = vadd.s32 536870912, %v222_v43  ;;  %v463_v18 = vrot.slane %v462_v13, 2 }
  0x42   :  { %v224_v48 = vshrl.u32 %v223_v44, 30  ;;  %v464_v21 = vmax.f32 %v462_v13, %v463_v18 }
  0x44   :  { %v225_v49 = vshll.u32 %v224_v48, 30  ;;  %v248_v17 = vsub.s32 4, %v224_v48  ;;  %v465_v26 = vrot.slane %v464_v21, 1 }
  0x46   :  { %v226_v51 = vsub.s32 %v222_v43, %v225_v49  ;;  %v249_v22 = vsel %vm126_vm4, %v248_v17, %v224_v48  ;;  %v466_v27 = vmax.f32 %v464_v21, %v465_v26 }
  0x47   :  { %v251_v29 = vsel %vm125_vm5, 0, %v249_v22 }
  0x48   :  { %vm227_vm11 = vcmp.lt.s32.totalorder %v226_v51, 0  ;;  %v228_v45 = vsub.s32 0, %v226_v51  ;;  %476 = vst [vmem:[#allocation7 + $0x1e] sm:$0x1] %v466_v27  ;;  %v422_v28 = vadd.s32 3, %v251_v29  ;;  %v268_v39 = vand.u32 3, %v251_v29 }
  0x4a   :  { %v229_v53 = vsel %vm227_vm11, %v228_v45, %v226_v51  ;;  %v423_v40 = vand.u32 3, %v422_v28  ;;  %vm273_vm6 = vcmp.eq.s32.totalorder %v268_v39, 2  ;;  %vm269_vm8 = vcmp.lt.s32.totalorder %v268_v39, 2 }
  0x4b   :  { %v230_v54 = vclz %v229_v53  ;;  %vm270_vm9 = vcmp.eq.s32.totalorder %v268_v39, 0 }
  0x4c   :  { %vm428_vm7 = vcmp.eq.s32.totalorder %v423_v40, 2  ;;  %vm425_vm10 = vcmp.eq.s32.totalorder %v423_v40, 0  ;;  %vm424_vm11 = vcmp.lt.s32.totalorder %v423_v40, 2 }
  0x4d   :  { %v514_v55 = vadd.s32 4294967294, %v230_v54 }
  0x4f   :  { %vm515_vm12 = vcmp.lt.s32.totalorder %v514_v55, 0 }
  0x50   :  { %v233_v58 = vsel %vm515_vm12, 0, %v514_v55  ;;  %vm267_vm12 = vweird.f32 %v652_v1 }
  0x51   :  { %v234_v60 = vsub.s32 32, %v233_v58  ;;  %v235_v61 = vshll.u32 %v226_v51, %v233_v58  ;;  %v238_v0 = vsub.s32 4294967266, %v233_v58 }
  0x53   :  { %v236_v2 = vshrl.u32 %v218_v25, %v234_v60  ;;  %v239_v3 = vadd.s32 127, %v238_v0 }
  0x55   :  { %v237_v6 = vor.u32 %v236_v2, %v235_v61  ;;  %v240_v7 = vshll.u32 %v239_v3, 23 }
  0x57   :  { %v241_v14 = vor.u32 4788187, %v240_v7  ;;  %v244_v32 = vcvt.s32.f32 %v237_v6 }
  0x59   :  { %v242_v15 = vand.u32 2147483647, %v241_v14 }
  0x5b   :  { %v245_v16 = vmul.f32 %v244_v32, %v242_v15 }
  0x5d   :  { %v246_v19 = vxor.u32 2147483648, %v245_v16 }
  0x5f   :  { %v247_v47 = vsel %vm126_vm4, %v246_v19, %v245_v16 }
  0x60   :  { %v250_v23 = vsel %vm125_vm5, %v652_v1, %v247_v47 }
  0x61   :  { %v252_v62 = vmul.f32 %v250_v23, %v250_v23 }
  0x63   :  { %v253_v30 = vmul.f32 -0.001358992, %v252_v62  ;;  %v260_v10 = vmul.f32 -0.00019511016, %v252_v62 }
  0x65   :  { %v254_v33 = vadd.f32 0.041655596, %v253_v30  ;;  %v261_v63 = vadd.f32 0.008332121, %v260_v10 }
  0x67   :  { %v255_v35 = vmul.f32 %v254_v33, %v252_v62  ;;  %v262_v36 = vmul.f32 %v261_v63, %v252_v62 }
  0x69   :  { %v256_v38 = vadd.f32 -0.4999988, %v255_v35  ;;  %v263_v4 = vadd.f32 -0.16666654, %v262_v36 }
  0x6b   :  { %v257_v41 = vmul.f32 %v256_v38, %v252_v62  ;;  %v264_v42 = vmul.f32 %v263_v4, %v252_v62 }
  0x6d   :  { %v258_v43 = vadd.f32 1.0, %v257_v41  ;;  %v265_v44 = vadd.f32 1.0, %v264_v42 }
  0x6f   :  { %v266_v48 = vmul.f32 %v265_v44, %v250_v23  ;;  %v274_v49 = vxor.u32 2147483648, %v258_v43 }
  0x71   :  { %v271_v51 = vxor.u32 2147483648, %v266_v48  ;;  %v275_v45 = vsel %vm273_vm6, %v274_v49, %v266_v48  ;;  %v430_v53 = vsel %vm428_vm7, %v274_v49, %v266_v48 }
  0x73   :  { %v272_v54 = vsel %vm270_vm9, %v258_v43, %v271_v51  ;;  %v427_v55 = vsel %vm425_vm10, %v258_v43, %v271_v51 }
  0x74   :  { %v276_v56 = vsel %vm269_vm8, %v272_v54, %v275_v45  ;;  %v431_v57 = vsel %vm424_vm11, %v427_v55, %v430_v53 }
  0x75   :  { %v277_v25 = vsel %vm267_vm12, nan, %v276_v56  ;;  %v432_v58 = vsel %vm267_vm12, nan, %v431_v57 }
  0x76   :  { %v433_v59 = vmul.f32 %v277_v25, %v66_v8  ;;  %v434_v60 = vmul.f32 %v432_v58, %v68_v12  ;;  %v438_v61 = vmul.f32 %v277_v25, %v76_v20  ;;  %v439_v0 = vmul.f32 %v432_v58, %v78_v24 }
  0x77   :  { %v443_v2 = vmul.f32 %v277_v25, %v86_v34  ;;  %v444_v3 = vmul.f32 %v432_v58, %v88_v37 }
  0x78   :  { %v435_v5 = vadd.f32 %v434_v60, %v433_v59  ;;  %v440_v1 = vadd.f32 %v439_v0, %v438_v61 }
  0x79   :  { %v445_v6 = vadd.f32 %v444_v3, %v443_v2 }
  0x7a   :  { %v436_v7 = vmul.f32 2.0, %v435_v5  ;;  %v441_v11 = vmul.f32 2.0, %v440_v1 }
  0x7b   :  { %v446_v14 = vmul.f32 2.0, %v445_v6 }
  0x7c   :  { %v437_v8 = vadd.f32 %v436_v7, %v741_v31  ;;  %v442_v12 = vadd.f32 %v441_v11, %v759_v52 }
  0x7d   :  { %v447_v20 = vadd.f32 %v446_v14, %v766_v9 }
  0x7e   :  { %473 = vst [vmem:[#allocation7 + $0x1b] sm:$0x1] %v437_v8 }
  0x7f   :  { %474 = vst [vmem:[#allocation7 + $0x1c] sm:$0x1] %v442_v12 }
  0x80   :  { %475 = vst [vmem:[#allocation7 + $0x1d] sm:$0x1] %v447_v20 }
  0x81   :  { %490 = dma.vmem_to_hbm [thread:$0]  %s483_s12, 512, %s485_s15, [#allocation4], %s604_s21, %s604_s21, %s605_s22  }
  0x82   :  { %600 = dma.done.wait [#allocation4], 512  }
  0x83   :  { %601 = vsyncadd [#allocation4], 4294966784 }
  0x84   :  { %495 = vsyncpa [#allocation3], 1 }
  0x85   :  { %496 = vsyncpa [#allocation4], 1 }
  0x86   :  { %497 = vsyncpa [#allocation5], 1 }

</bundles_post_ra>
